<compile_context>
chip_gen: v6e
topology: v6e:2x2x1
jax: 0.10.0
libtpu: 0.0.40
codegen_flags: <defaults>
</compile_context>

<pallas_src>
import jax
import jax.numpy as jnp
from jax.experimental import pallas as pl
from jax.experimental.pallas import tpu as pltpu

BN_EPS = 1e-5
LANE = 128
SUB = 8


def _round_up(x, m):
    return (x + m - 1) // m * m


# ----------------------------------------------------------------------------- params
def init_params(key, input_size, h1, h2, output_size):
    """PyTorch nn.Linear-like init; weights stored transposed as (in, out)."""
    dims = [input_size, h1, h2, output_size]
    p = {}
    for i in range(3):
        fan_in, fan_out = dims[i], dims[i + 1]
        key, kw, kb = jax.random.split(key, 3)
        bound = 1.0 / (fan_in ** 0.5)
        p[f"w{i+1}"] = jax.random.uniform(kw, (fan_in, fan_out), jnp.float32, -bound, bound)
        p[f"b{i+1}"] = jax.random.uniform(kb, (fan_out,), jnp.float32, -bound, bound)
    for i, d in [(1, h1), (2, h2)]:
        p[f"gamma{i}"] = jnp.ones((d,), jnp.float32)
        p[f"beta{i}"] = jnp.zeros((d,), jnp.float32)
    return p


def pack_params(p, C):
    """Pack all params into one zero-padded (3*C + 3*SUB, C) f32 buffer.

    Row layout (offsets are multiples of 8, width C a multiple of 128, so every
    static in-kernel slice is (8,128)-tile aligned -> no relayout copies):
      [0      , C      )  W1 (zero-padded to C x C)
      [C      , C+8    )  row0=b1, row1=gamma1, row2=beta1
      [C+8    , 2C+8   )  W2 (zero-padded)
      [2C+8   , 2C+16  )  row0=b2, row1=gamma2, row2=beta2
      [2C+16  , 3C+16  )  W3 (zero-padded)
      [3C+16  , 3C+24  )  row0=b3
    """
    def pad_w(w):
        buf = jnp.zeros((C, C), jnp.float32)
        return buf.at[: w.shape[0], : w.shape[1]].set(w)

    def vec_block(vecs):
        buf = jnp.zeros((SUB, C), jnp.float32)
        for r, v in enumerate(vecs):
            buf = buf.at[r, : v.shape[0]].set(v)
        return buf

    return jnp.concatenate(
        [
            pad_w(p["w1"]), vec_block([p["b1"], p["gamma1"], p["beta1"]]),
            pad_w(p["w2"]), vec_block([p["b2"], p["gamma2"], p["beta2"]]),
            pad_w(p["w3"]), vec_block([p["b3"]]),
        ],
        axis=0,
    )


# ----------------------------------------------------------------------------- kernel
def _make_kernel(C, num_numerical, use_bf16):
    off_w1 = 0
    off_v1 = off_w1 + C
    off_w2 = off_v1 + SUB
    off_v2 = off_w2 + C
    off_w3 = off_v2 + SUB
    off_b3 = off_w3 + C
    mm_dtype = jnp.bfloat16 if use_bf16 else jnp.float32

    def kernel(x_ref, p_ref, o_ref):
        batch = x_ref.shape[0]
        inv_n = jnp.float32(1.0 / batch)

        def linear(h, off_w, off_b):
            w = p_ref[off_w: off_w + C, :]          # static, tile-aligned slice
            b = p_ref[off_b: off_b + 1, :]
            acc = jnp.dot(h.astype(mm_dtype), w.astype(mm_dtype),
                          preferred_element_type=jnp.float32)
            return acc + b

        def batchnorm(h, off_v):
            gamma = p_ref[off_v + 1: off_v + 2, :]
            beta = p_ref[off_v + 2: off_v + 3, :]
            # one-pass statistics: sum and sum of squares
            s1 = jnp.sum(h, axis=0, keepdims=True)
            s2 = jnp.sum(h * h, axis=0, keepdims=True)
            mean = s1 * inv_n
            var = jnp.maximum(s2 * inv_n - mean * mean, 0.0)  # biased (train-mode) var
            return (h - mean) * jax.lax.rsqrt(var + BN_EPS) * gamma + beta

        h = x_ref[...].astype(jnp.float32)
        h = linear(h, off_w1, off_v1)                  # fc1
        h = jnp.maximum(batchnorm(h, off_v1), 0.0)     # bn1 + relu
        h = linear(h, off_w2, off_v2)                  # fc2
        h = jnp.maximum(batchnorm(h, off_v2), 0.0)     # bn2 + relu
        h = linear(h, off_w3, off_b3)                  # fc3

        # heterogeneous head: relu on numerical columns, sigmoid on categorical ones
        col = jax.lax.broadcasted_iota(jnp.int32, h.shape, 1)
        out = jnp.where(col < num_numerical, jnp.maximum(h, 0.0), jax.nn.sigmoid(h))
        o_ref[...] = out.astype(o_ref.dtype)

    return kernel


# ----------------------------------------------------------------------------- wrapper
def generative_model_forward(x, packed_params, *, output_size, num_numerical_inputs,
                             use_bf16_matmul=False):
    batch, in_dim = x.shape
    C = packed_params.shape[1]
    x_pad = jnp.pad(x, ((0, 0), (0, C - in_dim)))      # zero-pad features to lane width

    kernel = _make_kernel(C, num_numerical_inputs, use_bf16_matmul)
    out_pad = pl.pallas_call(
        kernel,
        out_shape=jax.ShapeDtypeStruct((batch, C), x.dtype),
        in_specs=[pl.BlockSpec(memory_space=pltpu.MemorySpace.VMEM),
                  pl.BlockSpec(memory_space=pltpu.MemorySpace.VMEM)],
        out_specs=pl.BlockSpec(memory_space=pltpu.MemorySpace.VMEM),
        compiler_params=pltpu.CompilerParams(vmem_limit_bytes=32 * 1024 * 1024),
    )(x_pad, packed_params)
    return out_pad[:, :output_size]


# ----------------------------------------------------------------------------- reference
def reference_forward(x, p, num_numerical_inputs):
    """Pure-JAX mirror of the PyTorch forward() (train-mode BatchNorm1d)."""
    def bn(h, gamma, beta):
        mean = jnp.mean(h, axis=0, keepdims=True)
        var = jnp.mean((h - mean) ** 2, axis=0, keepdims=True)
        return (h - mean) / jnp.sqrt(var + BN_EPS) * gamma + beta

    h = x @ p["w1"] + p["b1"]
    h = jnp.maximum(bn(h, p["gamma1"], p["beta1"]), 0.0)
    h = h @ p["w2"] + p["b2"]
    h = jnp.maximum(bn(h, p["gamma2"], p["beta2"]), 0.0)
    h = h @ p["w3"] + p["b3"]
    out_num = jnp.maximum(h[:, :num_numerical_inputs], 0.0)
    out_cat = jax.nn.sigmoid(h[:, num_numerical_inputs:])
    return jnp.concatenate([out_num, out_cat], axis=1)


if __name__ == "__main__":
    # Small heterogeneous-tabular config.
    num_numerical_inputs = 6
    num_categorical_inputs = 8
    input_size = 14                 # generator latent/code dimension
    hidden_size_1 = 32
    hidden_size_2 = 16
    output_size = num_numerical_inputs + num_categorical_inputs   # 14
    batch = 8                       # multiple of 8 sublanes (f32); full batch per call (BN)

    key = jax.random.PRNGKey(0)
    key, kx, kp = jax.random.split(key, 3)
    x = jax.random.normal(kx, (batch, input_size), jnp.float32)

    params = init_params(kp, input_size, hidden_size_1, hidden_size_2, output_size)
    C = _round_up(max(input_size, hidden_size_1, hidden_size_2, output_size), LANE)
    packed = pack_params(params, C)       # single (3*C + 24, C) VMEM-resident buffer

    # f32 MXU path (bit-faithful to the PyTorch-semantics reference)
    out = generative_model_forward(
        x, packed, output_size=output_size,
        num_numerical_inputs=num_numerical_inputs, use_bf16_matmul=False)
    out = jax.block_until_ready(out)

    ref = reference_forward(x, params, num_numerical_inputs)
    assert out.shape == (batch, output_size)
    assert jnp.allclose(out, ref, atol=1e-4, rtol=1e-4), "f32 kernel mismatch vs JAX reference"

    # bf16 MXU-operand path (f32 accumulate) -- the lever that matters when the
    # hidden sizes / batch are scaled up; loose tolerance because operands are bf16.
    out_bf16 = generative_model_forward(
        x, packed, output_size=output_size,
        num_numerical_inputs=num_numerical_inputs, use_bf16_matmul=True)
    out_bf16 = jax.block_until_ready(out_bf16)
    assert float(jnp.max(jnp.abs(out_bf16 - ref))) < 0.15, "bf16 kernel diverged from reference"

    # TODO(synk): eval-mode BatchNorm (running_mean/running_var) would be passed as two
    # extra rows per BN block in the packed buffer; default nn.Module forward is train-mode.
    print("KERNEL_OK")
</pallas_src>

<mosaic_0001>
module attributes {stable_mosaic.version = 11 : i64} {
  func.func @kernel(%arg0: memref<8x128xf32, #tpu.memory_space<vmem>>, %arg1: memref<408x128xf32, #tpu.memory_space<vmem>>, %arg2: memref<8x128xf32, #tpu.memory_space<vmem>>) attributes {dimension_semantics = [], scalar_prefetch = 0 : i64, scratch_operands = 0 : i64, tpu.core_type = #tpu.core_type<tc>} {
    %c0 = arith.constant 0 : index
    %c0_0 = arith.constant 0 : index
    %0 = vector.load %arg0[%c0, %c0_0] : memref<8x128xf32, #tpu.memory_space<vmem>>, vector<8x128xf32>
    %c0_1 = arith.constant 0 : index
    %c0_2 = arith.constant 0 : index
    %1 = vector.load %arg1[%c0_1, %c0_2] : memref<408x128xf32, #tpu.memory_space<vmem>>, vector<128x128xf32>
    %c128 = arith.constant 128 : index
    %c0_3 = arith.constant 0 : index
    %2 = vector.load %arg1[%c128, %c0_3] : memref<408x128xf32, #tpu.memory_space<vmem>>, vector<1x128xf32>
    %cst = arith.constant dense<0.000000e+00> : vector<8x128xf32>
    %3 = tpu.matmul %0, %1, %cst {dimension_numbers = #tpu.dot_dimension_numbers<[1], [0], [0], [1], [0, 0, 1, 1], [], []>} : vector<8x128xf32>, vector<128x128xf32>, vector<8x128xf32> -> vector<8x128xf32>
    %4 = vector.broadcast %2 : vector<1x128xf32> to vector<8x128xf32>
    %5 = arith.addf %3, %4 : vector<8x128xf32>
    %c129 = arith.constant 129 : index
    %c0_4 = arith.constant 0 : index
    %6 = vector.load %arg1[%c129, %c0_4] : memref<408x128xf32, #tpu.memory_space<vmem>>, vector<1x128xf32>
    %c130 = arith.constant 130 : index
    %c0_5 = arith.constant 0 : index
    %7 = vector.load %arg1[%c130, %c0_5] : memref<408x128xf32, #tpu.memory_space<vmem>>, vector<1x128xf32>
    %cst_6 = arith.constant dense<0.000000e+00> : vector<128xf32>
    %8 = vector.multi_reduction <add>, %5, %cst_6 [0] : vector<8x128xf32> to vector<128xf32>
    %9 = vector.shape_cast %8 : vector<128xf32> to vector<1x128xf32>
    %10 = arith.mulf %5, %5 : vector<8x128xf32>
    %cst_7 = arith.constant dense<0.000000e+00> : vector<128xf32>
    %11 = vector.multi_reduction <add>, %10, %cst_7 [0] : vector<8x128xf32> to vector<128xf32>
    %12 = vector.shape_cast %11 : vector<128xf32> to vector<1x128xf32>
    %cst_8 = arith.constant 1.250000e-01 : f32
    %13 = vector.broadcast %cst_8 : f32 to vector<1x128xf32>
    %14 = arith.mulf %9, %13 : vector<1x128xf32>
    %cst_9 = arith.constant 1.250000e-01 : f32
    %15 = vector.broadcast %cst_9 : f32 to vector<1x128xf32>
    %16 = arith.mulf %12, %15 : vector<1x128xf32>
    %17 = arith.mulf %14, %14 : vector<1x128xf32>
    %18 = arith.subf %16, %17 : vector<1x128xf32>
    %cst_10 = arith.constant 0.000000e+00 : f32
    %19 = vector.broadcast %cst_10 : f32 to vector<1x128xf32>
    %20 = arith.maximumf %18, %19 : vector<1x128xf32>
    %21 = vector.broadcast %14 : vector<1x128xf32> to vector<8x128xf32>
    %22 = arith.subf %5, %21 : vector<8x128xf32>
    %cst_11 = arith.constant 9.99999974E-6 : f32
    %23 = vector.broadcast %cst_11 : f32 to vector<1x128xf32>
    %24 = arith.addf %20, %23 : vector<1x128xf32>
    %25 = math.rsqrt %24 : vector<1x128xf32>
    %26 = vector.broadcast %25 : vector<1x128xf32> to vector<8x128xf32>
    %27 = arith.mulf %22, %26 : vector<8x128xf32>
    %28 = vector.broadcast %6 : vector<1x128xf32> to vector<8x128xf32>
    %29 = arith.mulf %27, %28 : vector<8x128xf32>
    %30 = vector.broadcast %7 : vector<1x128xf32> to vector<8x128xf32>
    %31 = arith.addf %29, %30 : vector<8x128xf32>
    %cst_12 = arith.constant 0.000000e+00 : f32
    %32 = vector.broadcast %cst_12 : f32 to vector<8x128xf32>
    %33 = arith.maximumf %31, %32 : vector<8x128xf32>
    %c136 = arith.constant 136 : index
    %c0_13 = arith.constant 0 : index
    %34 = vector.load %arg1[%c136, %c0_13] : memref<408x128xf32, #tpu.memory_space<vmem>>, vector<128x128xf32>
    %c264 = arith.constant 264 : index
    %c0_14 = arith.constant 0 : index
    %35 = vector.load %arg1[%c264, %c0_14] : memref<408x128xf32, #tpu.memory_space<vmem>>, vector<1x128xf32>
    %cst_15 = arith.constant dense<0.000000e+00> : vector<8x128xf32>
    %36 = tpu.matmul %33, %34, %cst_15 {dimension_numbers = #tpu.dot_dimension_numbers<[1], [0], [0], [1], [0, 0, 1, 1], [], []>} : vector<8x128xf32>, vector<128x128xf32>, vector<8x128xf32> -> vector<8x128xf32>
    %37 = vector.broadcast %35 : vector<1x128xf32> to vector<8x128xf32>
    %38 = arith.addf %36, %37 : vector<8x128xf32>
    %c265 = arith.constant 265 : index
    %c0_16 = arith.constant 0 : index
    %39 = vector.load %arg1[%c265, %c0_16] : memref<408x128xf32, #tpu.memory_space<vmem>>, vector<1x128xf32>
    %c266 = arith.constant 266 : index
    %c0_17 = arith.constant 0 : index
    %40 = vector.load %arg1[%c266, %c0_17] : memref<408x128xf32, #tpu.memory_space<vmem>>, vector<1x128xf32>
    %cst_18 = arith.constant dense<0.000000e+00> : vector<128xf32>
    %41 = vector.multi_reduction <add>, %38, %cst_18 [0] : vector<8x128xf32> to vector<128xf32>
    %42 = vector.shape_cast %41 : vector<128xf32> to vector<1x128xf32>
    %43 = arith.mulf %38, %38 : vector<8x128xf32>
    %cst_19 = arith.constant dense<0.000000e+00> : vector<128xf32>
    %44 = vector.multi_reduction <add>, %43, %cst_19 [0] : vector<8x128xf32> to vector<128xf32>
    %45 = vector.shape_cast %44 : vector<128xf32> to vector<1x128xf32>
    %cst_20 = arith.constant 1.250000e-01 : f32
    %46 = vector.broadcast %cst_20 : f32 to vector<1x128xf32>
    %47 = arith.mulf %42, %46 : vector<1x128xf32>
    %cst_21 = arith.constant 1.250000e-01 : f32
    %48 = vector.broadcast %cst_21 : f32 to vector<1x128xf32>
    %49 = arith.mulf %45, %48 : vector<1x128xf32>
    %50 = arith.mulf %47, %47 : vector<1x128xf32>
    %51 = arith.subf %49, %50 : vector<1x128xf32>
    %cst_22 = arith.constant 0.000000e+00 : f32
    %52 = vector.broadcast %cst_22 : f32 to vector<1x128xf32>
    %53 = arith.maximumf %51, %52 : vector<1x128xf32>
    %54 = vector.broadcast %47 : vector<1x128xf32> to vector<8x128xf32>
    %55 = arith.subf %38, %54 : vector<8x128xf32>
    %cst_23 = arith.constant 9.99999974E-6 : f32
    %56 = vector.broadcast %cst_23 : f32 to vector<1x128xf32>
    %57 = arith.addf %53, %56 : vector<1x128xf32>
    %58 = math.rsqrt %57 : vector<1x128xf32>
    %59 = vector.broadcast %58 : vector<1x128xf32> to vector<8x128xf32>
    %60 = arith.mulf %55, %59 : vector<8x128xf32>
    %61 = vector.broadcast %39 : vector<1x128xf32> to vector<8x128xf32>
    %62 = arith.mulf %60, %61 : vector<8x128xf32>
    %63 = vector.broadcast %40 : vector<1x128xf32> to vector<8x128xf32>
    %64 = arith.addf %62, %63 : vector<8x128xf32>
    %cst_24 = arith.constant 0.000000e+00 : f32
    %65 = vector.broadcast %cst_24 : f32 to vector<8x128xf32>
    %66 = arith.maximumf %64, %65 : vector<8x128xf32>
    %c272 = arith.constant 272 : index
    %c0_25 = arith.constant 0 : index
    %67 = vector.load %arg1[%c272, %c0_25] : memref<408x128xf32, #tpu.memory_space<vmem>>, vector<128x128xf32>
    %c400 = arith.constant 400 : index
    %c0_26 = arith.constant 0 : index
    %68 = vector.load %arg1[%c400, %c0_26] : memref<408x128xf32, #tpu.memory_space<vmem>>, vector<1x128xf32>
    %cst_27 = arith.constant dense<0.000000e+00> : vector<8x128xf32>
    %69 = tpu.matmul %66, %67, %cst_27 {dimension_numbers = #tpu.dot_dimension_numbers<[1], [0], [0], [1], [0, 0, 1, 1], [], []>} : vector<8x128xf32>, vector<128x128xf32>, vector<8x128xf32> -> vector<8x128xf32>
    %70 = vector.broadcast %68 : vector<1x128xf32> to vector<8x128xf32>
    %71 = arith.addf %69, %70 : vector<8x128xf32>
    %72 = tpu.iota {dimensions = array<i32: 1>} : vector<8x128xi32>
    %c6_i32 = arith.constant 6 : i32
    %73 = vector.broadcast %c6_i32 : i32 to vector<8x128xi32>
    %74 = arith.cmpi slt, %72, %73 : vector<8x128xi32>
    %cst_28 = arith.constant 0.000000e+00 : f32
    %75 = vector.broadcast %cst_28 : f32 to vector<8x128xf32>
    %76 = arith.maximumf %71, %75 : vector<8x128xf32>
    %77 = arith.negf %71 : vector<8x128xf32>
    %78 = math.exp %77 : vector<8x128xf32>
    %cst_29 = arith.constant 1.000000e+00 : f32
    %79 = vector.broadcast %cst_29 : f32 to vector<8x128xf32>
    %80 = arith.addf %79, %78 : vector<8x128xf32>
    %81 = arith.divf %79, %80 : vector<8x128xf32>
    %82 = arith.select %74, %76, %81 : vector<8x128xi1>, vector<8x128xf32>
    %c0_30 = arith.constant 0 : index
    %c0_31 = arith.constant 0 : index
    %83 = vector.load %arg2[%c0_30, %c0_31] : memref<8x128xf32, #tpu.memory_space<vmem>>, vector<8x128xf32>
    tpu.vector_store %arg2[%c0_30, %c0_31], %82 {strides = array<i32>} : memref<8x128xf32, #tpu.memory_space<vmem>>, vector<8x128xf32>,
    return
  }
}

</mosaic_0001>

<bundles_post_ra>
// kernel: tpu_custom_call.1
= control target key start
LH: loop header
LB: loop body
LE: loop exit
PB: predicated region body
PF: predicated region fallthrough
CT: control target
= control target key end

     0   :  { %7 = vsyncpa [#allocation3], 0  ;;  %s740_s0 = inlined_call_operand.hbm [shape: f32[8,128], index: 0, kind: input, shape index: {}]   ;;  %s741_s1 = inlined_call_operand.hbm [shape: f32[408,128], index: 1, kind: input, shape index: {}]   ;;  %s742_s2 = inlined_call_operand.hbm [shape: f32[8,128], index: 2, kind: output, shape index: {}]  }
   0x1   :  { %8 = vsyncpa [#allocation6], 0 }
   0x2   :  { %9 = vsyncpa [#allocation4], 0  ;;  %s655_s9 = smov [#allocation2]   ;;  %s656_s11 = smov [#allocation5]  }
   0x3   :  { %s16_s10 = sshll.u32 %s655_s9, 4  ;;  %s25_s12 = sshll.u32 %s656_s11, 4  ;;  %s17_s10 = int_to_ptr.vmem [resolvable:$true] %s16_s10  ;;  %s26_s12 = int_to_ptr.vmem [resolvable:$true] %s25_s12 }
   0x4   :  { %s597_s13 = scalar_lea.vmem %s17_s10, 128  ;;  %p602_p1 = scmp.lt.s32.totalorder %s17_s10, %s17_s10 }
   0x5   :  { %p598_p0 = scmp.ne.s32.totalorder %s17_s10, %s597_s13  ;;  %p603_p2 = scmp.lt.s32.totalorder %s597_s13, %s597_s13 }
   0x7   :  { %p604_p3 = por %p603_p2, %p602_p1 }
   0x9   :  { %p605_p4 = pnand %p604_p3, %p598_p0 }
   0xb   :  { %608 = shalt.err (!%p605_p4)
}
   0xc   :  { %19 = dma.hbm_to_vmem [thread:$0]  %s740_s0, 128, %s17_s10, [#allocation3]  }
   0xd   :  { %s617_s16 = scalar_lea.vmem %s26_s12, 6528  ;;  %p622_p6 = scmp.lt.s32.totalorder %s26_s12, %s26_s12 }
   0xe   :  { %p618_p5 = scmp.ne.s32.totalorder %s26_s12, %s617_s16  ;;  %p623_p7 = scmp.lt.s32.totalorder %s617_s16, %s617_s16 }
  0x10   :  { %p624_p8 = por %p623_p7, %p622_p6 }
  0x12   :  { %p625_p9 = pnand %p624_p8, %p618_p5 }
  0x14   :  { %628 = shalt.err (!%p625_p9)
}
  0x15   :  { %s657_s17 = smov 128   ;;  %s658_s18 = smov 8  }
  0x16   :  { %31 = dma.hbm_to_vmem [thread:$0]  %s741_s1, 6528, %s26_s12, [#allocation6], %s657_s17, %s657_s17, %s658_s18  }
  0x17   :  { %649 = dma.done.wait [#allocation3], 128  }
  0x18   :  { %650 = vsyncadd [#allocation3], 4294967168 }
  0x19   :  { %651 = dma.done.wait [#allocation6], 6528  }
  0x1a   :  { %652 = vsyncadd [#allocation6], 4294960768  ;;  %v659_v0 = vmov 0.0   ;;  %vm660_vm0 = vmmov 0   ;;  %v54_v1 = vld [vmem:[#allocation5 + $0x78] sm:$0xff]  ;;  %v53_v2 = vld [vmem:[#allocation5 + $0x70] sm:$0xff] }
  0x1b   :  { %469 = vmatprep.subr.mxu0 %v659_v0  ;;  %501 = vmatprep.mubr.msk.f32.mxu0 %vm660_vm0, %v659_v0  ;;  %v52_v3 = vld [vmem:[#allocation5 + $0x68] sm:$0xff]  ;;  %v51_v4 = vld [vmem:[#allocation5 + $0x60] sm:$0xff]  ;;  %v50_v5 = vld [vmem:[#allocation5 + $0x58] sm:$0xff]  ;;  %s661_s0 = smov [#allocation7]  }
  0x1c   :  { %504 = vmatprep.subr.mxu1 %v659_v0  ;;  %536 = vmatprep.mubr.msk.f32.mxu1 %vm660_vm0, %v659_v0  ;;  %v49_v6 = vld [vmem:[#allocation5 + $0x50] sm:$0xff]  ;;  %v48_v7 = vld [vmem:[#allocation5 + $0x48] sm:$0xff]  ;;  %v47_v8 = vld [vmem:[#allocation5 + $0x40] sm:$0xff]  ;;  %s400_s1 = sshll.u32 %s661_s0, 4  ;;  %s401_s1 = int_to_ptr.vmem [resolvable:$true] %s400_s1 }
  0x1d   :  { %470 = vmatpush3.msra.mxu0 %v54_v1  ;;  %v46_v9 = vld [vmem:[#allocation5 + $0x38] sm:$0xff]  ;;  %v45_v10 = vld [vmem:[#allocation5 + $0x30] sm:$0xff]  ;;  %v44_v11 = vld [vmem:[#allocation5 + $0x28] sm:$0xff]  ;;  %s629_s21 = scalar_lea.vmem %s401_s1, 128  ;;  %p634_p11 = scmp.lt.s32.totalorder %s401_s1, %s401_s1 }
  0x1e   :  { %471 = vmatprep.subr.mxu0 %v659_v0  ;;  %v43_v12 = vld [vmem:[#allocation5 + $0x20] sm:$0xff]  ;;  %v42_v13 = vld [vmem:[#allocation5 + $0x18] sm:$0xff]  ;;  %v41_v14 = vld [vmem:[#allocation5 + $0x10] sm:$0xff]  ;;  %p630_p10 = scmp.ne.s32.totalorder %s401_s1, %s629_s21  ;;  %p635_p12 = scmp.lt.s32.totalorder %s629_s21, %s629_s21 }
  0x1f   :  { %472 = vmatpush3.msra.mxu0 %v53_v2  ;;  %v40_v15 = vld [vmem:[#allocation5 + $0x8] sm:$0xff]  ;;  %v39_v16 = vld [vmem:[#allocation5] sm:$0xff]  ;;  %v38_v17 = vld [vmem:[#allocation2] sm:$0xff] }
  0x20   :  { %473 = vmatprep.subr.mxu0 %v659_v0  ;;  %v180_v18 = vld [vmem:[#allocation5 + $0x100] sm:$0xff]  ;;  %v179_v19 = vld [vmem:[#allocation5 + $0xf8] sm:$0xff]  ;;  %v178_v20 = vld [vmem:[#allocation5 + $0xf0] sm:$0xff]  ;;  %p636_p13 = por %p635_p12, %p634_p11 }
  0x21   :  { %474 = vmatpush3.msra.mxu0 %v52_v3  ;;  %505 = vmatpush3.msra.mxu1 %v180_v18  ;;  %v177_v21 = vld [vmem:[#allocation5 + $0xe8] sm:$0xff]  ;;  %v176_v22 = vld [vmem:[#allocation5 + $0xe0] sm:$0xff]  ;;  %v175_v23 = vld [vmem:[#allocation5 + $0xd8] sm:$0xff] }
  0x22   :  { %475 = vmatprep.subr.mxu0 %v659_v0  ;;  %506 = vmatprep.subr.mxu1 %v659_v0  ;;  %v174_v24 = vld [vmem:[#allocation5 + $0xd0] sm:$0xff]  ;;  %v173_v25 = vld [vmem:[#allocation5 + $0xc8] sm:$0xff]  ;;  %v172_v26 = vld [vmem:[#allocation5 + $0xc0] sm:$0xff]  ;;  %p637_p0 = pnand %p636_p13, %p630_p10 }
  0x23   :  { %476 = vmatpush3.msra.mxu0 %v51_v4  ;;  %507 = vmatpush3.msra.mxu1 %v179_v19  ;;  %v171_v27 = vld [vmem:[#allocation5 + $0xb8] sm:$0xff]  ;;  %v170_v28 = vld [vmem:[#allocation5 + $0xb0] sm:$0xff]  ;;  %v169_v29 = vld [vmem:[#allocation5 + $0xa8] sm:$0xff] }
  0x24   :  { %477 = vmatprep.subr.mxu0 %v659_v0  ;;  %508 = vmatprep.subr.mxu1 %v659_v0  ;;  %v168_v30 = vld [vmem:[#allocation5 + $0xa0] sm:$0xff]  ;;  %v167_v31 = vld [vmem:[#allocation5 + $0x98] sm:$0xff]  ;;  %v166_v32 = vld [vmem:[#allocation5 + $0x90] sm:$0xff] }
  0x25   :  { %478 = vmatpush3.msra.mxu0 %v50_v5  ;;  %509 = vmatpush3.msra.mxu1 %v178_v20  ;;  %v165_v33 = vld [vmem:[#allocation5 + $0x88] sm:$0xff]  ;;  %v410_v34 = vld [vmem:[#allocation5 + $0x80] ss:$0 sm:$0xff]  ;;  %v411_v59 = vld [vmem:[#allocation5 + $0x81] ss:$0 sm:$0xff] }
  0x26   :  { %479 = vmatprep.subr.mxu0 %v659_v0  ;;  %510 = vmatprep.subr.mxu1 %v659_v0  ;;  %v412_v61 = vld [vmem:[#allocation5 + $0x82] ss:$0 sm:$0xff]  ;;  %v306_v2 = vld [vmem:[#allocation5 + $0x188] sm:$0xff]  ;;  %v304_v4 = vld [vmem:[#allocation5 + $0x178] sm:$0xff] }
  0x27   :  { %480 = vmatpush3.msra.mxu0 %v49_v6  ;;  %511 = vmatpush3.msra.mxu1 %v177_v21  ;;  %v305_v3 = vld [vmem:[#allocation5 + $0x180] sm:$0xff]  ;;  %v303_v5 = vld [vmem:[#allocation5 + $0x170] sm:$0xff]  ;;  %v302_v6 = vld [vmem:[#allocation5 + $0x168] sm:$0xff] }
  0x28   :  { %481 = vmatprep.subr.mxu0 %v659_v0  ;;  %512 = vmatprep.subr.mxu1 %v659_v0  ;;  %v413_v18 = vld [vmem:[#allocation5 + $0x108] ss:$0 sm:$0xff] }
  0x29   :  { %482 = vmatpush3.msra.mxu0 %v48_v7  ;;  %513 = vmatpush3.msra.mxu1 %v176_v22  ;;  %v301_v7 = vld [vmem:[#allocation5 + $0x160] sm:$0xff] }
  0x2a   :  { %483 = vmatprep.subr.mxu0 %v659_v0  ;;  %514 = vmatprep.subr.mxu1 %v659_v0 }
  0x2b   :  { %484 = vmatpush3.msra.mxu0 %v47_v8  ;;  %515 = vmatpush3.msra.mxu1 %v175_v23  ;;  %v300_v8 = vld [vmem:[#allocation5 + $0x158] sm:$0xff] }
  0x2c   :  { %485 = vmatprep.subr.mxu0 %v659_v0  ;;  %516 = vmatprep.subr.mxu1 %v659_v0 }
  0x2d   :  { %486 = vmatpush3.msra.mxu0 %v46_v9  ;;  %517 = vmatpush3.msra.mxu1 %v174_v24  ;;  %v299_v9 = vld [vmem:[#allocation5 + $0x150] sm:$0xff] }
  0x2e   :  { %487 = vmatprep.subr.mxu0 %v659_v0  ;;  %518 = vmatprep.subr.mxu1 %v659_v0 }
  0x2f   :  { %488 = vmatpush3.msra.mxu0 %v45_v10  ;;  %519 = vmatpush3.msra.mxu1 %v173_v25  ;;  %v298_v10 = vld [vmem:[#allocation5 + $0x148] sm:$0xff] }
  0x30   :  { %489 = vmatprep.subr.mxu0 %v659_v0  ;;  %520 = vmatprep.subr.mxu1 %v659_v0 }
  0x31   :  { %490 = vmatpush3.msra.mxu0 %v44_v11  ;;  %521 = vmatpush3.msra.mxu1 %v172_v26  ;;  %v297_v11 = vld [vmem:[#allocation5 + $0x140] sm:$0xff] }
  0x32   :  { %491 = vmatprep.subr.mxu0 %v659_v0  ;;  %522 = vmatprep.subr.mxu1 %v659_v0 }
  0x33   :  { %492 = vmatpush3.msra.mxu0 %v43_v12  ;;  %523 = vmatpush3.msra.mxu1 %v171_v27  ;;  %v296_v12 = vld [vmem:[#allocation5 + $0x138] sm:$0xff] }
  0x34   :  { %493 = vmatprep.subr.mxu0 %v659_v0  ;;  %524 = vmatprep.subr.mxu1 %v659_v0 }
  0x35   :  { %494 = vmatpush3.msra.mxu0 %v42_v13  ;;  %525 = vmatpush3.msra.mxu1 %v170_v28  ;;  %v295_v13 = vld [vmem:[#allocation5 + $0x130] sm:$0xff] }
  0x36   :  { %495 = vmatprep.subr.mxu0 %v659_v0  ;;  %526 = vmatprep.subr.mxu1 %v659_v0 }
  0x37   :  { %496 = vmatpush3.msra.mxu0 %v41_v14  ;;  %527 = vmatpush3.msra.mxu1 %v169_v29  ;;  %v294_v14 = vld [vmem:[#allocation5 + $0x128] sm:$0xff] }
  0x38   :  { %497 = vmatprep.subr.mxu0 %v659_v0  ;;  %528 = vmatprep.subr.mxu1 %v659_v0 }
  0x39   :  { %498 = vmatpush3.msra.mxu0 %v40_v15  ;;  %529 = vmatpush3.msra.mxu1 %v168_v30  ;;  %v293_v15 = vld [vmem:[#allocation5 + $0x120] sm:$0xff] }
  0x3a   :  { %499 = vmatprep.subr.mxu0 %v659_v0  ;;  %530 = vmatprep.subr.mxu1 %v659_v0 }
  0x3b   :  { %500 = vmatpush3.msra.mxu0 %v39_v16  ;;  %531 = vmatpush3.msra.mxu1 %v167_v31  ;;  %v292_v16 = vld [vmem:[#allocation5 + $0x118] sm:$0xff] }
  0x3c   :  { %502 = vmatmul.mubr.f32.vlgmr.msra.gmra.mxu0 %v38_v17  ;;  %539 = vmatprep.subr.mxu0 %v659_v0  ;;  %v291_v17 = vld [vmem:[#allocation5 + $0x110] sm:$0xff] }
  0x3d   :  { %571 = vmatprep.mubr.msk.f32.mxu0 %vm660_vm0, %v659_v0  ;;  %532 = vmatprep.subr.mxu1 %v659_v0 }
  0x3e   :  { %533 = vmatpush3.msra.mxu1 %v166_v32  ;;  %540 = vmatpush3.msra.mxu0 %v306_v2 }
  0x3f   :  { %534 = vmatprep.subr.mxu1 %v659_v0  ;;  %541 = vmatprep.subr.mxu0 %v659_v0 }
  0x40   :  { %535 = vmatpush3.msra.mxu1 %v165_v33  ;;  %542 = vmatpush3.msra.mxu0 %v305_v3 }
  0x41   :  { %543 = vmatprep.subr.mxu0 %v659_v0 }
  0x42   :  { %544 = vmatpush3.msra.mxu0 %v304_v4 }
  0x43   :  { %545 = vmatprep.subr.mxu0 %v659_v0 }
  0x44   :  { %546 = vmatpush3.msra.mxu0 %v303_v5 }
  0x45   :  { %547 = vmatprep.subr.mxu0 %v659_v0 }
  0x46   :  { %548 = vmatpush3.msra.mxu0 %v302_v6 }
  0x47   :  { %549 = vmatprep.subr.mxu0 %v659_v0 }
  0x48   :  { %550 = vmatpush3.msra.mxu0 %v301_v7 }
  0x49   :  { %551 = vmatprep.subr.mxu0 %v659_v0 }
  0x4a   :  { %552 = vmatpush3.msra.mxu0 %v300_v8 }
  0x4b   :  { %553 = vmatprep.subr.mxu0 %v659_v0 }
  0x4c   :  { %554 = vmatpush3.msra.mxu0 %v299_v9 }
  0x4d   :  { %555 = vmatprep.subr.mxu0 %v659_v0 }
  0x4e   :  { %556 = vmatpush3.msra.mxu0 %v298_v10 }
  0x4f   :  { %557 = vmatprep.subr.mxu0 %v659_v0 }
  0x50   :  { %558 = vmatpush3.msra.mxu0 %v297_v11 }
  0x51   :  { %559 = vmatprep.subr.mxu0 %v659_v0 }
  0x52   :  { %560 = vmatpush3.msra.mxu0 %v296_v12 }
  0x53   :  { %561 = vmatprep.subr.mxu0 %v659_v0 }
  0x54   :  { %562 = vmatpush3.msra.mxu0 %v295_v13 }
  0x55   :  { %563 = vmatprep.subr.mxu0 %v659_v0 }
  0x56   :  { %564 = vmatpush3.msra.mxu0 %v294_v14 }
  0x57   :  { %565 = vmatprep.subr.mxu0 %v659_v0 }
  0x58   :  { %566 = vmatpush3.msra.mxu0 %v293_v15 }
  0x59   :  { %567 = vmatprep.subr.mxu0 %v659_v0 }
  0x5a   :  { %568 = vmatpush3.msra.mxu0 %v292_v16 }
  0x5b   :  { %569 = vmatprep.subr.mxu0 %v659_v0 }
  0x5c   :  { %570 = vmatpush3.msra.mxu0 %v291_v17 }
  0xfc   :  { %v126_v35 = vpop.f32.mrf.mxu0 }
  0xfd   :  { %v127_v36 = vadd.f32 %v410_v34, %v126_v35 }
  0xfe   :  { %v503_v37 = vpop.f32.mrf.mxu0 }
  0xff   :  { %v132_v38 = vrot.slane %v127_v36, 4  ;;  %v138_v39 = vmul.f32 %v127_v36, %v127_v36 }
 0x101   :  { %v133_v40 = vadd.f32 %v132_v38, %v127_v36  ;;  %v139_v41 = vrot.slane %v138_v39, 4 }
 0x103   :  { %v134_v42 = vrot.slane %v133_v40, 2  ;;  %v140_v43 = vadd.f32 %v139_v41, %v138_v39 }
 0x105   :  { %v135_v44 = vadd.f32 %v134_v42, %v133_v40  ;;  %v141_v45 = vrot.slane %v140_v43, 2  ;;  %v414_v42 = vld [vmem:[#allocation5 + $0x109] ss:$0 sm:$0xff] }
 0x107   :  { %v136_v46 = vrot.slane %v135_v44, 1  ;;  %v142_v47 = vadd.f32 %v141_v45, %v140_v43 }
 0x109   :  { %v137_v48 = vadd.f32 %v136_v46, %v135_v44  ;;  %v143_v49 = vrot.slane %v142_v47, 1  ;;  %v415_v44 = vld [vmem:[#allocation5 + $0x10a] ss:$0 sm:$0xff] }
 0x10b   :  { %v144_v50 = vadd.f32 %v143_v49, %v142_v47  ;;  %v145_v51 = vmul.f32 0.125, %v137_v48  ;;  %v416_v48 = vld [vmem:[#allocation5 + $0x190] ss:$0 sm:$0xff] }
 0x10d   :  { %v146_v52 = vmul.f32 0.125, %v144_v50  ;;  %v147_v53 = vmul.f32 %v145_v51, %v145_v51  ;;  %v150_v57 = vsub.f32 %v127_v36, %v145_v51 }
 0x10f   :  { %v148_v54 = vsub.f32 %v146_v52, %v147_v53 }
 0x111   :  { %v149_v55 = vmax.f32 %v148_v54, 0.0 }
 0x113   :  { %v151_v56 = vadd.f32 1e-05, %v149_v55  ;;  %v382_v55 = vlaneseq }
 0x115   :  { %581 = vrsqrt.f32 %v151_v56  ;;  %v383_v56 = vand.u32 127, %v382_v55 }
 0x117   :  { %vm384_vm1 = vcmp.lt.s32.totalorder %v383_v56, 6 }
 0x122   :  { %v582_v58 = vpop.eup %581 }
 0x123   :  { %v153_v60 = vmul.f32 %v582_v58, %v150_v57 }
 0x125   :  { %v158_v62 = vmul.f32 %v411_v59, %v153_v60 }
 0x127   :  { %v163_v63 = vadd.f32 %v412_v61, %v158_v62 }
 0x129   :  { %v164_v1 = vmax.f32 %v163_v63, 0.0 }
 0x12b   :  { %537 = vmatmul.mubr.f32.vlgmr.msra.gmra.mxu1 %v164_v1 }
 0x1eb   :  { %v252_v19 = vpop.f32.mrf.mxu1 }
 0x1ec   :  { %v253_v20 = vadd.f32 %v413_v18, %v252_v19 }
 0x1ed   :  { %v538_v21 = vpop.f32.mrf.mxu1 }
 0x1ee   :  { %v258_v22 = vrot.slane %v253_v20, 4  ;;  %v264_v23 = vmul.f32 %v253_v20, %v253_v20 }
 0x1f0   :  { %v259_v24 = vadd.f32 %v258_v22, %v253_v20  ;;  %v265_v25 = vrot.slane %v264_v23, 4 }
 0x1f2   :  { %v260_v26 = vrot.slane %v259_v24, 2  ;;  %v266_v27 = vadd.f32 %v265_v25, %v264_v23 }
 0x1f4   :  { %v261_v28 = vadd.f32 %v260_v26, %v259_v24  ;;  %v267_v29 = vrot.slane %v266_v27, 2 }
 0x1f6   :  { %v262_v30 = vrot.slane %v261_v28, 1  ;;  %v268_v31 = vadd.f32 %v267_v29, %v266_v27 }
 0x1f8   :  { %v263_v32 = vadd.f32 %v262_v30, %v261_v28  ;;  %v269_v33 = vrot.slane %v268_v31, 1 }
 0x1fa   :  { %v270_v34 = vadd.f32 %v269_v33, %v268_v31  ;;  %v271_v35 = vmul.f32 0.125, %v263_v32 }
 0x1fc   :  { %v272_v0 = vmul.f32 0.125, %v270_v34  ;;  %v273_v36 = vmul.f32 %v271_v35, %v271_v35  ;;  %v276_v40 = vsub.f32 %v253_v20, %v271_v35 }
 0x1fe   :  { %v274_v37 = vsub.f32 %v272_v0, %v273_v36 }
 0x200   :  { %v275_v38 = vmax.f32 %v274_v37, 0.0 }
 0x202   :  { %v277_v39 = vadd.f32 1e-05, %v275_v38 }
 0x204   :  { %583 = vrsqrt.f32 %v277_v39 }
 0x211   :  { %v584_v41 = vpop.eup %583 }
 0x212   :  { %v279_v43 = vmul.f32 %v584_v41, %v276_v40 }
 0x214   :  { %v284_v45 = vmul.f32 %v414_v42, %v279_v43 }
 0x216   :  { %v289_v46 = vadd.f32 %v415_v44, %v284_v45 }
 0x218   :  { %v290_v47 = vmax.f32 %v289_v46, 0.0 }
 0x21a   :  { %572 = vmatmul.mubr.f32.vlgmr.msra.gmra.mxu0 %v290_v47 }
 0x2da   :  { %v378_v49 = vpop.f32.mrf.mxu0 }
 0x2db   :  { %v379_v50 = vadd.f32 %v416_v48, %v378_v49 }
 0x2dc   :  { %v573_v51 = vpop.f32.mrf.mxu0 }
 0x2dd   :  { %v417_v52 = vmul.f32 -1.442695, %v379_v50  ;;  %v385_v57 = vmax.f32 %v379_v50, 0.0 }
 0x2df   :  { %585 = vpow2.f32 %v417_v52 }
 0x2ec   :  { %v586_v53 = vpop.eup %585 }
 0x2ed   :  { %v389_v54 = vadd.f32 1.0, %v586_v53 }
 0x2ef   :  { %587 = vrcp.f32 %v389_v54 }
 0x2fc   :  { %v588_v58 = vpop.eup %587 }
 0x2fd   :  { %v392_v59 = vsel %vm384_vm1, %v385_v57, %v588_v58 }
 0x2fe   :  { %393 = vst [vmem:[#allocation7] sm:$0xff] %v392_v59 }
 0x2ff   :  { %640 = shalt.err (!%p637_p0)
}
 0x300   :  { %403 = dma.vmem_to_hbm [thread:$0]  %s401_s1, 128, %s742_s2, [#allocation4]  }
 0x301   :  { %653 = dma.done.wait [#allocation4], 128  }
 0x302   :  { %654 = vsyncadd [#allocation4], 4294967168 }
 0x303   :  { %407 = vsyncpa [#allocation3], 1 }
 0x304   :  { %408 = vsyncpa [#allocation6], 1 }
 0x305   :  { %409 = vsyncpa [#allocation4], 1 }

</bundles_post_ra>
